<compile_context>
chip_gen: v5e
topology: v5e:2x2
jax: 0.10.0
libtpu: 0.0.40
codegen_flags: <defaults>
</compile_context>

<pallas_src>
import jax
import jax.numpy as jnp
from jax.experimental import pallas as pl
from jax.experimental.pallas import tpu as pltpu


def _make_ce_kernel(N, C, TN, TC):
    """Build the CE kernel body with static shape info closed over."""
    mask_cols = (C % TC) != 0
    mask_rows = (N % TN) != 0

    def kernel(logits_ref, labels_ref, out_ref, m_ref, l_ref, p_ref):
        i = pl.program_id(0)          # row tile
        j = pl.program_id(1)          # class tile
        nj = pl.num_programs(1)

        # per-row-tile init of the online-softmax state
        @pl.when(j == 0)
        def _init_row_tile():
            m_ref[...] = jnp.full((TN, 1), -jnp.inf, jnp.float32)
            l_ref[...] = jnp.zeros((TN, 1), jnp.float32)
            p_ref[...] = jnp.zeros((TN, 1), jnp.float32)

        # local (un-shifted) column index; labels / C limit are shifted by
        # j*TC instead ((TN,1)/scalar ops) -> saves a full-tile VALU add.
        local_col = jax.lax.broadcasted_iota(jnp.int32, (TN, TC), 1)

        def update(apply_col_mask):
            logits = logits_ref[...]                       # native dtype tile
            shifted_labels = labels_ref[...] - j * TC      # (TN, 1) int32

            # fused label-logit pick: native-dtype select, f32 accumulation
            p_ref[...] += jnp.sum(
                jnp.where(local_col == shifted_labels, logits, 0.0)
                .astype(jnp.float32),
                axis=-1, keepdims=True)

            if apply_col_mask:
                # only the (single) partial last class tile pays for this
                logits = jnp.where(local_col < (C - j * TC), logits, -jnp.inf)

            # online logsumexp: max in native dtype, accumulators in f32,
            # f32 cast only on the exp-path subtract.
            tile_max = jnp.max(logits, axis=-1, keepdims=True).astype(jnp.float32)
            m_prev = m_ref[...]
            m_new = jnp.maximum(m_prev, tile_max)
            alpha = jnp.exp(m_prev - m_new)
            l_ref[...] = alpha * l_ref[...] + jnp.sum(
                jnp.exp(logits.astype(jnp.float32) - m_new),
                axis=-1, keepdims=True)
            m_ref[...] = m_new

        if mask_cols:
            @pl.when(j < nj - 1)
            def _full_tiles():
                update(False)

            @pl.when(j == nj - 1)
            def _edge_tile():
                update(True)
        else:
            update(False)

        # end of a row tile: emit this tile's per-row losses as output
        @pl.when(j == nj - 1)
        def _finish_row_tile():
            row_loss = m_ref[...] + jnp.log(l_ref[...]) - p_ref[...]   # (TN, 1)
            if mask_rows:
                row = i * TN + jax.lax.broadcasted_iota(jnp.int32, (TN, 1), 0)
                row_loss = jnp.where(row < N, row_loss, 0.0)
            out_ref[...] = row_loss

    return kernel


def _pick_class_tile(C, itemsize):
    if C <= 4096:
        return C                          # full class dim fits in one block
    cap = 8192 if itemsize <= 2 else 4096
    for cand in (8192, 4096, 2048, 1024, 512, 256, 128):
        if cand <= cap and C % cand == 0:
            return cand                   # no column masking needed, ever
    return cap                            # fallback: last class tile is masked


def ce_loss_pallas(predicted, labels, block_rows=None, block_classes=None):
    """predicted: (N, C) float logits (any float dtype), labels: (N,) ints."""
    N, C = predicted.shape
    itemsize = jnp.dtype(predicted.dtype).itemsize
    labels2d = labels.reshape(N, 1).astype(jnp.int32)

    # ---- tile selection --------------------------------------------------
    TC = block_classes if block_classes is not None else _pick_class_tile(C, itemsize)
    if block_rows is not None:
        TN = block_rows
    else:
        TN = N if N <= 256 else 256
    # block dims must be (8,128)-divisible or equal the full array dim
    assert TN == N or TN % 8 == 0, (TN, N)
    assert TC == C or TC % 128 == 0, (TC, C)

    NI = pl.cdiv(N, TN)
    NJ = pl.cdiv(C, TC)

    kernel = _make_ce_kernel(N, C, TN, TC)

    cost = pl.CostEstimate(
        flops=5 * N * C,
        transcendentals=N * C,
        bytes_accessed=N * C * itemsize + N * 4 + NI * TN * 4,
    )

    per_row = pl.pallas_call(
        kernel,
        out_shape=jax.ShapeDtypeStruct((NI * TN, 1), jnp.float32),
        grid_spec=pltpu.PrefetchScalarGridSpec(
            num_scalar_prefetch=0,
            grid=(NI, NJ),
            in_specs=[
                # logits tile, streamed in native dtype (bf16 stays bf16)
                pl.BlockSpec((TN, TC), lambda i, j: (i, j)),
                # labels tile: depends only on the row tile -> one DMA / row tile
                pl.BlockSpec((TN, 1), lambda i, j: (i, 0)),
            ],
            # per-row losses, one block per row tile (written at j == nj-1);
            # row axis can therefore be 'parallel' across v7x's 2 TensorCores
            out_specs=pl.BlockSpec((TN, 1), lambda i, j: (i, 0)),
            scratch_shapes=[
                pltpu.VMEM((TN, 1), jnp.float32),   # running row max  m
                pltpu.VMEM((TN, 1), jnp.float32),   # running row sum  l
                pltpu.VMEM((TN, 1), jnp.float32),   # picked label logit p
            ],
        ),
        compiler_params=pltpu.CompilerParams(
            dimension_semantics=("parallel", "arbitrary"),
            vmem_limit_bytes=48 * 1024 * 1024,
        ),
        cost_estimate=cost,
    )(predicted, labels2d)

    # mean reduction (padded rows were zeroed inside the kernel)
    return jnp.sum(per_row) * (1.0 / float(N))


def ce_loss_forward(x):
    """Mirrors ce_loss.forward: x is a dict with 'labels' and 'predicted'."""
    return ce_loss_pallas(x["predicted"], x["labels"])


def _ce_loss_ref(predicted, labels):
    # pure-JAX reference (matches torch.nn.CrossEntropyLoss, mean reduction)
    logp = jax.nn.log_softmax(predicted.astype(jnp.float32), axis=-1)
    nll = -jnp.take_along_axis(logp, labels[:, None].astype(jnp.int32), axis=-1)
    return jnp.mean(nll)


if __name__ == "__main__":
    key = jax.random.PRNGKey(0)
    k1, k2 = jax.random.split(key)

    # small shapes; chosen so the forced-tile run exercises a real (2, 3) grid
    # with both row-padding (12 % 8 != 0) and class-padding (320 % 128 != 0).
    N, C = 12, 320
    predicted = jax.random.normal(k1, (N, C), dtype=jnp.float32)
    labels = jax.random.randint(k2, (N,), 0, C, dtype=jnp.int32)

    # 1) default (single-block) path
    loss_auto = jax.block_until_ready(
        ce_loss_forward({"predicted": predicted, "labels": labels}))

    # 2) forced multi-tile path: grid = (2, 3), online logsumexp, edge-tile
    #    column mask (pl.when-gated) and padded-row mask all exercised.
    loss_tiled = jax.block_until_ready(
        ce_loss_pallas(predicted, labels, block_rows=8, block_classes=128))

    # 3) native bf16 logits: pick/max in bf16, f32 cast only at the exp path
    pred_bf16 = predicted.astype(jnp.bfloat16)
    loss_bf16 = jax.block_until_ready(ce_loss_pallas(pred_bf16, labels))

    ref_f32 = _ce_loss_ref(predicted, labels)
    ref_bf16 = _ce_loss_ref(pred_bf16, labels)

    assert jnp.allclose(loss_auto, ref_f32, atol=1e-5, rtol=1e-5), (loss_auto, ref_f32)
    assert jnp.allclose(loss_tiled, ref_f32, atol=1e-5, rtol=1e-5), (loss_tiled, ref_f32)
    assert jnp.allclose(loss_bf16, ref_bf16, atol=1e-5, rtol=1e-5), (loss_bf16, ref_bf16)

    print("KERNEL_OK")
</pallas_src>

<mosaic_0001>
module attributes {stable_mosaic.version = 11 : i64} {
  func.func @kernel(%arg0: i32, %arg1: i32, %arg2: memref<12x320xf32, #tpu.memory_space<vmem>>, %arg3: memref<12x1xi32, #tpu.memory_space<vmem>>, %arg4: memref<12x1xf32, #tpu.memory_space<vmem>>, %arg5: memref<12x1xf32, #tpu.memory_space<vmem>>, %arg6: memref<12x1xf32, #tpu.memory_space<vmem>>, %arg7: memref<12x1xf32, #tpu.memory_space<vmem>>) attributes {dimension_semantics = [#tpu.dimension_semantics<parallel>, #tpu.dimension_semantics<arbitrary>], iteration_bounds = array<i64: 1, 1>, scalar_prefetch = 0 : i64, scratch_operands = 3 : i64, tpu.core_type = #tpu.core_type<tc>, window_params = [{transform_indices = @transform_0, window_bounds = array<i64: 12, 320>}, {transform_indices = @transform_1, window_bounds = array<i64: 12, 1>}, {transform_indices = @transform_2, window_bounds = array<i64: 12, 1>}]} {
    %c0_i32 = arith.constant 0 : i32
    %0 = arith.cmpi eq, %arg1, %c0_i32 : i32
    %1 = arith.extui %0 : i1 to i32
    %c0_i32_0 = arith.constant 0 : i32
    %2 = arith.cmpi ne, %1, %c0_i32_0 : i32
    scf.if %2 {
      %cst_21 = arith.constant 0xFF800000 : f32
      %37 = vector.broadcast %cst_21 : f32 to vector<12x1xf32>
      %c0_22 = arith.constant 0 : index
      %c0_23 = arith.constant 0 : index
      %38 = vector.load %arg5[%c0_22, %c0_23] : memref<12x1xf32, #tpu.memory_space<vmem>>, vector<12x1xf32>
      tpu.vector_store %arg5[%c0_22, %c0_23], %37 {strides = array<i32>} : memref<12x1xf32, #tpu.memory_space<vmem>>, vector<12x1xf32>,
      %cst_24 = arith.constant 0.000000e+00 : f32
      %39 = vector.broadcast %cst_24 : f32 to vector<12x1xf32>
      %c0_25 = arith.constant 0 : index
      %c0_26 = arith.constant 0 : index
      %40 = vector.load %arg6[%c0_25, %c0_26] : memref<12x1xf32, #tpu.memory_space<vmem>>, vector<12x1xf32>
      tpu.vector_store %arg6[%c0_25, %c0_26], %39 {strides = array<i32>} : memref<12x1xf32, #tpu.memory_space<vmem>>, vector<12x1xf32>,
      %cst_27 = arith.constant 0.000000e+00 : f32
      %41 = vector.broadcast %cst_27 : f32 to vector<12x1xf32>
      %c0_28 = arith.constant 0 : index
      %c0_29 = arith.constant 0 : index
      %42 = vector.load %arg7[%c0_28, %c0_29] : memref<12x1xf32, #tpu.memory_space<vmem>>, vector<12x1xf32>
      tpu.vector_store %arg7[%c0_28, %c0_29], %41 {strides = array<i32>} : memref<12x1xf32, #tpu.memory_space<vmem>>, vector<12x1xf32>,
    } else {
    }
    %3 = tpu.iota {dimensions = array<i32: 1>} : vector<12x320xi32>
    %c0 = arith.constant 0 : index
    %c0_1 = arith.constant 0 : index
    %4 = vector.load %arg2[%c0, %c0_1] : memref<12x320xf32, #tpu.memory_space<vmem>>, vector<12x320xf32>
    %c0_2 = arith.constant 0 : index
    %c0_3 = arith.constant 0 : index
    %5 = vector.load %arg3[%c0_2, %c0_3] : memref<12x1xi32, #tpu.memory_space<vmem>>, vector<12x1xi32>
    %c320_i32 = arith.constant 320 : i32
    %6 = arith.muli %arg1, %c320_i32 : i32
    %7 = vector.broadcast %6 : i32 to vector<12x1xi32>
    %8 = arith.subi %5, %7 : vector<12x1xi32>
    %c0_4 = arith.constant 0 : index
    %c0_5 = arith.constant 0 : index
    %9 = vector.load %arg7[%c0_4, %c0_5] : memref<12x1xf32, #tpu.memory_space<vmem>>, vector<12x1xf32>
    %10 = vector.broadcast %8 : vector<12x1xi32> to vector<12x320xi32>
    %11 = arith.cmpi eq, %3, %10 : vector<12x320xi32>
    %cst = arith.constant 0.000000e+00 : f32
    %12 = vector.broadcast %cst : f32 to vector<12x320xf32>
    %13 = arith.select %11, %4, %12 : vector<12x320xi1>, vector<12x320xf32>
    %cst_6 = arith.constant dense<0.000000e+00> : vector<12xf32>
    %14 = vector.multi_reduction <add>, %13, %cst_6 [1] : vector<12x320xf32> to vector<12xf32>
    %15 = vector.shape_cast %14 : vector<12xf32> to vector<12x1xf32>
    %16 = arith.addf %9, %15 : vector<12x1xf32>
    %c0_7 = arith.constant 0 : index
    %c0_8 = arith.constant 0 : index
    %17 = vector.load %arg7[%c0_7, %c0_8] : memref<12x1xf32, #tpu.memory_space<vmem>>, vector<12x1xf32>
    tpu.vector_store %arg7[%c0_7, %c0_8], %16 {strides = array<i32>} : memref<12x1xf32, #tpu.memory_space<vmem>>, vector<12x1xf32>,
    %cst_9 = arith.constant dense<0xFF800000> : vector<12xf32>
    %18 = vector.multi_reduction <maximumf>, %4, %cst_9 [1] : vector<12x320xf32> to vector<12xf32>
    %19 = vector.shape_cast %18 : vector<12xf32> to vector<12x1xf32>
    %c0_10 = arith.constant 0 : index
    %c0_11 = arith.constant 0 : index
    %20 = vector.load %arg5[%c0_10, %c0_11] : memref<12x1xf32, #tpu.memory_space<vmem>>, vector<12x1xf32>
    %21 = arith.maximumf %20, %19 : vector<12x1xf32>
    %22 = arith.subf %20, %21 : vector<12x1xf32>
    %23 = math.exp %22 : vector<12x1xf32>
    %c0_12 = arith.constant 0 : index
    %c0_13 = arith.constant 0 : index
    %24 = vector.load %arg6[%c0_12, %c0_13] : memref<12x1xf32, #tpu.memory_space<vmem>>, vector<12x1xf32>
    %25 = arith.mulf %23, %24 : vector<12x1xf32>
    %26 = vector.broadcast %21 : vector<12x1xf32> to vector<12x320xf32>
    %27 = arith.subf %4, %26 : vector<12x320xf32>
    %28 = math.exp %27 : vector<12x320xf32>
    %cst_14 = arith.constant dense<0.000000e+00> : vector<12xf32>
    %29 = vector.multi_reduction <add>, %28, %cst_14 [1] : vector<12x320xf32> to vector<12xf32>
    %30 = vector.shape_cast %29 : vector<12xf32> to vector<12x1xf32>
    %31 = arith.addf %25, %30 : vector<12x1xf32>
    %c0_15 = arith.constant 0 : index
    %c0_16 = arith.constant 0 : index
    %32 = vector.load %arg6[%c0_15, %c0_16] : memref<12x1xf32, #tpu.memory_space<vmem>>, vector<12x1xf32>
    tpu.vector_store %arg6[%c0_15, %c0_16], %31 {strides = array<i32>} : memref<12x1xf32, #tpu.memory_space<vmem>>, vector<12x1xf32>,
    %c0_17 = arith.constant 0 : index
    %c0_18 = arith.constant 0 : index
    %33 = vector.load %arg5[%c0_17, %c0_18] : memref<12x1xf32, #tpu.memory_space<vmem>>, vector<12x1xf32>
    tpu.vector_store %arg5[%c0_17, %c0_18], %21 {strides = array<i32>} : memref<12x1xf32, #tpu.memory_space<vmem>>, vector<12x1xf32>,
    %c0_i32_19 = arith.constant 0 : i32
    %34 = arith.cmpi eq, %arg1, %c0_i32_19 : i32
    %35 = arith.extui %34 : i1 to i32
    %c0_i32_20 = arith.constant 0 : i32
    %36 = arith.cmpi ne, %35, %c0_i32_20 : i32
    scf.if %36 {
      %c0_21 = arith.constant 0 : index
      %c0_22 = arith.constant 0 : index
      %37 = vector.load %arg5[%c0_21, %c0_22] : memref<12x1xf32, #tpu.memory_space<vmem>>, vector<12x1xf32>
      %c0_23 = arith.constant 0 : index
      %c0_24 = arith.constant 0 : index
      %38 = vector.load %arg6[%c0_23, %c0_24] : memref<12x1xf32, #tpu.memory_space<vmem>>, vector<12x1xf32>
      %39 = math.log %38 : vector<12x1xf32>
      %40 = arith.addf %37, %39 : vector<12x1xf32>
      %c0_25 = arith.constant 0 : index
      %c0_26 = arith.constant 0 : index
      %41 = vector.load %arg7[%c0_25, %c0_26] : memref<12x1xf32, #tpu.memory_space<vmem>>, vector<12x1xf32>
      %42 = arith.subf %40, %41 : vector<12x1xf32>
      %c0_27 = arith.constant 0 : index
      %c0_28 = arith.constant 0 : index
      %43 = vector.load %arg4[%c0_27, %c0_28] : memref<12x1xf32, #tpu.memory_space<vmem>>, vector<12x1xf32>
      tpu.vector_store %arg4[%c0_27, %c0_28], %42 {strides = array<i32>} : memref<12x1xf32, #tpu.memory_space<vmem>>, vector<12x1xf32>,
    } else {
    }
    return
  }
  func.func @transform_0(%arg0: i32, %arg1: i32) -> (i32, i32) {
    %c0_i32 = arith.constant 0 : i32
    return %arg0, %arg1 : i32, i32
  }
  func.func @transform_1(%arg0: i32, %arg1: i32) -> (i32, i32) {
    %c0_i32 = arith.constant 0 : i32
    %c0_i32_0 = arith.constant 0 : i32
    return %arg0, %c0_i32 : i32, i32
  }
  func.func @transform_2(%arg0: i32, %arg1: i32) -> (i32, i32) {
    %c0_i32 = arith.constant 0 : i32
    %c0_i32_0 = arith.constant 0 : i32
    return %arg0, %c0_i32 : i32, i32
  }
}

</mosaic_0001>

<bundles_post_ra>
// kernel: tpu_custom_call.1
= control target key start
LH: loop header
LB: loop body
LE: loop exit
PB: predicated region body
PF: predicated region fallthrough
CT: control target
= control target key end

     0   :  { %7 = vsyncpa [#allocation6], 0  ;;  %s247_s12 = smov [#allocation5]   ;;  %s248_s14 = smov 384   ;;  %s358_s0 = inlined_call_operand.hbm [shape: f32[12,320], index: 0, kind: input, shape index: {}]   ;;  %s359_s1 = inlined_call_operand.vmem [shape: s32[12,1], index: 1, kind: input, shape index: {}]   ;;  %s360_s2 = inlined_call_operand.vmem [shape: f32[12,1], index: 2, kind: output, shape index: {}]  }
   0x1   :  { %s12_s11 = sshll.u32 %s358_s0, 4  ;;  %s14_s13 = sshll.u32 %s247_s12, 4  ;;  %s13_s11 = int_to_ptr.hbm [resolvable:$true] %s12_s11  ;;  %s15_s13 = int_to_ptr.vmem [resolvable:$true] %s14_s13 }
   0x2   :  { %s249_s15 = smov 24  }
   0x3   :  { %20 = dma.hbm_to_vmem [thread:$0]  %s13_s11, 768, %s15_s13, [#allocation6], %s248_s14, %s248_s14, %s249_s15  }
   0x4   :  { %245 = dma.done.wait [#allocation6], 768  }
   0x5   :  { %246 = vsyncadd [#allocation6], 4294966528  ;;  %vm33_vm0 = vcmask 3072   ;;  %v250_v0 = vmov -inf   ;;  %vm81_vm1 = vcmask 1043456   ;;  %vm85_vm2 = vcmask 519168  }
   0x6   :  { %34 = vst.msk [vmem:[#allocation2 + $0x8] sm:$0xf] %vm33_vm0, %v250_v0  ;;  %vm76_vm3 = vcmask 523264   ;;  %v272_v1 = vld [vmem:[#allocation5 + $0x18] sm:$0xf]  ;;  %v284_v7 = vld [vmem:[#allocation5 + $0x10] sm:$0xff]  ;;  %v39_v28 = vlaneseq }
   0x7   :  { %v274_v2 = vld [vmem:[#allocation5 + $0x20] sm:$0xf]  ;;  %v276_v3 = vld [vmem:[#allocation5 + $0x28] sm:$0xf]  ;;  %v101_v4 = vsel %vm81_vm1, %v272_v1, -inf  ;;  %v96_v10 = vsel %vm76_vm3, %v284_v7, -inf }
   0x8   :  { %v102_v5 = vsel %vm81_vm1, %v274_v2, -inf  ;;  %v103_v6 = vsel %vm85_vm2, %v276_v3, -inf  ;;  %v286_v9 = vld [vmem:[#allocation5] sm:$0xff]  ;;  %v44_v13 = vld [vmem:[#allocation5 + $0x8] sm:$0xff]  ;;  %vm31_vm4 = vcmask 7168   ;;  %v251_v15 = vmov 0  }
   0x9   :  { %v104_v8 = vmax.f32 %v101_v4, %v103_v6  ;;  %v97_v12 = vmax.f32 %v286_v9, %v96_v10  ;;  %32 = vst.msk [vmem:[#allocation2] sm:$0xff] %vm31_vm4, %v250_v0  ;;  %198 = vset.pattern.permute.xlu1 %v251_v15  ;;  %199 = vset.pattern.permute.xlu2 %v251_v15  ;;  %v252_v16 = vmov 0.0   ;;  %v50_v17 = vld [vmem:[%s359_s1 + $0x8] sm:$0xf]  ;;  %v49_v18 = vld [vmem:[%s359_s1] sm:$0xff]  ;;  %v40_v29 = vand.u32 127, %v39_v28 }
   0xa   :  { %200 = vset.pattern.permute.xlu0 %v251_v15  ;;  %36 = vst.msk [vmem:[#allocation3 + $0x8] sm:$0xf] %vm33_vm0, %v252_v16  ;;  %61 = vperm.xlu2 %199, %v50_v17  }
   0xb   :  { %v105_v11 = vmax.f32 %v104_v8, %v102_v5  ;;  %v98_v14 = vmax.f32 %v97_v12, %v44_v13  ;;  %35 = vst.msk [vmem:[#allocation3] sm:$0xff] %vm31_vm4, %v252_v16  ;;  %v41_v30 = vadd.s32 128, %v40_v29  ;;  %v42_v31 = vadd.s32 256, %v40_v29 }
   0xc   :  { %37 = vst.msk [vmem:[#allocation4] sm:$0xff] %vm31_vm4, %v252_v16 }
   0xd   :  { %106 = vmax.xlane.f32.xlu0 %v105_v11  ;;  %38 = vst.msk [vmem:[#allocation4 + $0x8] sm:$0xf] %vm33_vm0, %v252_v16  ;;  %v302_v19 = vld [vmem:[#allocation2 + $0x8] sm:$0xf] }
  0x10   :  { %v312_v23 = vld [vmem:[#allocation2] sm:$0xff] }
  0x11   :  { %v119_v17 = vld [vmem:[#allocation3 + $0x8] sm:$0xf] }
  0x12   :  { %58 = vperm.xlu2 %199, %v49_v18   ;;  %v118_v28 = vld [vmem:[#allocation3] sm:$0xff] }
  0x15   :  { %99 = vmax.xlane.f32.xlu0 %v98_v14  ;;  %v55_v14 = vld [vmem:[#allocation4] sm:$0xff] }
  0x64   :  { %v62_v27 = vpop.permute.xlu2 %61 }
  0x65   :  { %vm66_vm8 = vcmp.eq.s32.totalorder %v40_v29, %v62_v27  ;;  %vm67_vm9 = vcmp.eq.s32.totalorder %v41_v30, %v62_v27  ;;  %vm68_vm10 = vcmp.eq.s32.totalorder %v42_v31, %v62_v27 }
  0x66   :  { %v72_v0 = vsel %vm66_vm8, %v272_v1, 0.0  ;;  %v73_v4 = vsel %vm67_vm9, %v274_v2, 0.0  ;;  %v74_v10 = vsel %vm68_vm10, %v276_v3, 0.0 }
  0x67   :  { %v82_v8 = vsel %vm81_vm1, %v72_v0, 0.0  ;;  %v86_v12 = vsel %vm85_vm2, %v74_v10, 0.0 }
  0x6c   :  { %v59_v32 = vpop.permute.xlu2 %58 }
  0x6d   :  { %vm63_vm5 = vcmp.eq.s32.totalorder %v40_v29, %v59_v32  ;;  %vm64_vm6 = vcmp.eq.s32.totalorder %v41_v30, %v59_v32  ;;  %vm65_vm7 = vcmp.eq.s32.totalorder %v42_v31, %v59_v32 }
  0x6e   :  { %v69_v33 = vsel %vm63_vm5, %v286_v9, 0.0  ;;  %v70_v34 = vsel %vm64_vm6, %v44_v13, 0.0  ;;  %v71_v35 = vsel %vm65_vm7, %v284_v7, 0.0 }
  0x6f   :  { %v75_v36 = vadd.f32 %v70_v34, %v69_v33  ;;  %v77_v37 = vsel %vm76_vm3, %v71_v35, 0.0 }
  0x71   :  { %v78_v38 = vadd.f32 %v77_v37, %v75_v36 }
  0x73   :  { %79 = vadd.xlane.f32.xlu2 %v78_v38 }
  0x80   :  { %v107_v20 = vpop.xlane.xlu0 %106 }
  0x81   :  { %v305_v21 = vmax.f32 %v302_v19, %v107_v20 }
  0x83   :  { %v113_v22 = vsub.f32 %v302_v19, %v305_v21  ;;  %167 = vst.msk [vmem:[#allocation2 + $0x8] sm:$0xf] %vm33_vm0, %v305_v21  ;;  %129 = vperm.xlu1 %198, %v305_v21   ;;  %v56_v21 = vld [vmem:[#allocation4 + $0x8] sm:$0xf] }
  0x85   :  { %v116_v15 = vmul.f32 1.442695, %v113_v22 }
  0x88   :  { %v100_v24 = vpop.xlane.xlu0 %99 }
  0x89   :  { %v315_v25 = vmax.f32 %v312_v23, %v100_v24 }
  0x8a   :  { %v172_v33 = vld [vmem:[#allocation2 + $0x8] sm:$0xf] }
  0x8b   :  { %v112_v26 = vsub.f32 %v312_v23, %v315_v25  ;;  %166 = vst.msk [vmem:[#allocation2] sm:$0xff] %vm31_vm4, %v315_v25  ;;  %124 = vperm.xlu1 %198, %v315_v25  }
  0x8d   :  { %v114_v16 = vmul.f32 1.442695, %v112_v26 }
  0x92   :  { %v171_v38 = vld [vmem:[#allocation2] sm:$0xff] }
  0xf5   :  { %v130_v39 = vpop.permute.xlu1 %129 }
  0xf6   :  { %v135_v40 = vsub.f32 %v272_v1, %v130_v39  ;;  %v136_v41 = vsub.f32 %v274_v2, %v130_v39  ;;  %v137_v42 = vsub.f32 %v276_v3, %v130_v39  ;;  %v80_v1 = vpop.xlane.xlu2 %79 }
  0xf7   :  { %v90_v2 = vadd.f32 %v80_v1, %v55_v14 }
  0xf8   :  { %v144_v43 = vmul.f32 1.442695, %v135_v40  ;;  %v146_v44 = vmul.f32 1.442695, %v136_v41  ;;  %v148_v45 = vmul.f32 1.442695, %v137_v42 }
  0xf9   :  { %93 = vst.msk [vmem:[#allocation4] sm:$0xff] %vm31_vm4, %v90_v2 }
  0xfa   :  { %201 = vpow2.f32 %v144_v43 }
  0xfb   :  { %203 = vpow2.f32 %v146_v44 }
  0xfc   :  { %205 = vpow2.f32 %v148_v45 }
  0xfd   :  { %v125_v46 = vpop.permute.xlu1 %124 }
  0xfe   :  { %v132_v47 = vsub.f32 %v286_v9, %v125_v46  ;;  %v133_v48 = vsub.f32 %v44_v13, %v125_v46  ;;  %v134_v49 = vsub.f32 %v284_v7, %v125_v46  ;;  %v83_v9 = vsel %vm81_vm1, %v73_v4, 0.0 }
  0xff   :  { %v84_v11 = vadd.f32 %v83_v9, %v82_v8 }
 0x100   :  { %v202_v50 = vpop.eup %201  ;;  %v138_v51 = vmul.f32 1.442695, %v132_v47  ;;  %v140_v52 = vmul.f32 1.442695, %v133_v48  ;;  %v142_v53 = vmul.f32 1.442695, %v134_v49 }
 0x101   :  { %v204_v54 = vpop.eup %203  ;;  %v155_v55 = vsel %vm81_vm1, %v202_v50, 0.0  ;;  %v87_v13 = vadd.f32 %v86_v12, %v84_v11  ;;  %v181_v41 = vld [vmem:[#allocation4] sm:$0xff] }
 0x102   :  { %v206_v56 = vpop.eup %205  ;;  %207 = vpow2.f32 %v138_v51  ;;  %v156_v57 = vsel %vm81_vm1, %v204_v54, 0.0 }
 0x103   :  { %209 = vpow2.f32 %v140_v52  ;;  %v157_v58 = vadd.f32 %v156_v57, %v155_v55  ;;  %v158_v59 = vsel %vm85_vm2, %v206_v56, 0.0 }
 0x104   :  { %211 = vpow2.f32 %v142_v53 }
 0x105   :  { %v159_v60 = vadd.f32 %v158_v59, %v157_v58  ;;  %213 = vpow2.f32 %v116_v15 }
 0x106   :  { %215 = vpow2.f32 %v114_v16 }
 0x107   :  { %160 = vadd.xlane.f32.xlu1 %v159_v60 }
 0x108   :  { %v208_v61 = vpop.eup %207 }
 0x109   :  { %v210_v62 = vpop.eup %209 }
 0x10a   :  { %v212_v63 = vpop.eup %211  ;;  %v150_v5 = vadd.f32 %v210_v62, %v208_v61 }
 0x10b   :  { %v151_v6 = vsel %vm76_vm3, %v212_v63, 0.0  ;;  %v214_v3 = vpop.eup %213 }
 0x10c   :  { %v152_v7 = vadd.f32 %v151_v6, %v150_v5  ;;  %v121_v18 = vmul.f32 %v214_v3, %v119_v17  ;;  %v216_v27 = vpop.eup %215 }
 0x10d   :  { %v120_v29 = vmul.f32 %v216_v27, %v118_v28 }
 0x10e   :  { %153 = vadd.xlane.f32.xlu0 %v152_v7 }
 0x116   :  { %88 = vadd.xlane.f32.xlu0 %v87_v13 }
 0x17a   :  { %v161_v20 = vpop.xlane.xlu1 %160 }
 0x17b   :  { %v163_v24 = vadd.f32 %v161_v20, %v121_v18 }
 0x17d   :  { %165 = vst.msk [vmem:[#allocation3 + $0x8] sm:$0xf] %vm33_vm0, %v163_v24 }
 0x181   :  { %v154_v30 = vpop.xlane.xlu0 %153 }
 0x182   :  { %v162_v31 = vadd.f32 %v154_v30, %v120_v29 }
 0x184   :  { %v174_v19 = vld [vmem:[#allocation3 + $0x8] sm:$0xf]  ;;  %164 = vst.msk [vmem:[#allocation3] sm:$0xff] %vm31_vm4, %v162_v31 }
 0x185   :  { %217 = vlog2.f32 %v174_v19 }
 0x189   :  { %v89_v22 = vpop.xlane.xlu0 %88 }
 0x18a   :  { %v91_v23 = vadd.f32 %v89_v22, %v56_v21 }
 0x18b   :  { %v218_v25 = vpop.eup %217  ;;  %v173_v26 = vld [vmem:[#allocation3] sm:$0xff] }
 0x18c   :  { %219 = vlog2.f32 %v173_v26  ;;  %95 = vst.msk [vmem:[#allocation4 + $0x8] sm:$0xf] %vm33_vm0, %v91_v23  ;;  %v178_v32 = vmul.f32 0.6931472, %v218_v25 }
 0x18e   :  { %v180_v35 = vadd.f32 %v178_v32, %v172_v33 }
 0x192   :  { %v220_v34 = vpop.eup %219 }
 0x193   :  { %v176_v36 = vmul.f32 0.6931472, %v220_v34  ;;  %v182_v37 = vld [vmem:[#allocation4 + $0x8] sm:$0xf] }
 0x194   :  { %v184_v39 = vsub.f32 %v180_v35, %v182_v37 }
 0x195   :  { %v179_v40 = vadd.f32 %v176_v36, %v171_v38 }
 0x196   :  { %186 = vst.msk [vmem:[%s360_s2 + $0x8] sm:$0xf] %vm33_vm0, %v184_v39 }
 0x197   :  { %v183_v42 = vsub.f32 %v179_v40, %v181_v41 }
 0x199   :  { %185 = vst.msk [vmem:[%s360_s2] sm:$0xff] %vm31_vm4, %v183_v42 }
 0x19a   :  { %191 = vsyncpa [#allocation6], 1 }

</bundles_post_ra>
